<compile_context>
chip_gen: v7x
topology: tpu7x:2x2x1
jax: 0.10.0
libtpu: 0.0.40
codegen_flags: <defaults>
</compile_context>

<pallas_src>
import jax
import jax.numpy as jnp
from jax.experimental import pallas as pl
from jax.experimental.pallas import tpu as pltpu


def _round_up(x: int, m: int) -> int:
    return ((x + m - 1) // m) * m


def _choose_block(b: int, block_b: int) -> int:
    """Batch block: multiple of 8, <= block_b, and small enough that the grid has
    >= 2 steps whenever the batch allows it (so the 'parallel' axis can shard
    across both v7x TensorCores)."""
    if b <= 16:
        return 8
    half = _round_up((b + 1) // 2, 8)
    return max(8, min(_round_up(block_b, 8), half))


def _make_disc_kernel(num_layers: int, compute_dtype, negative_slope: float):
    """Kernel refs: states, actions, W1_s, W1_a, b1, [W_i, b_i]..., W_lastT, b_last, out."""

    def kernel(s_ref, a_ref, *refs):
        out_ref = refs[-1]
        p = refs[:-1]

        # First layer: split-weight matmul replaces concat([states, actions]).
        # Inputs arrive as f32 (single HBM read); cast to bf16 on the VPU here.
        s = s_ref[...].astype(compute_dtype)
        a = a_ref[...].astype(compute_dtype)
        h = (jnp.dot(s, p[0][...], preferred_element_type=jnp.float32)
             + jnp.dot(a, p[1][...], preferred_element_type=jnp.float32)
             + p[2][...])
        h = jnp.where(h > 0, h, negative_slope * h)  # LeakyReLU(0.01)

        # Hidden layers (all but the final out_features=1 layer).
        idx = 3
        for _ in range(1, num_layers - 1):
            w = p[idx][...]
            b = p[idx + 1][...]
            idx += 2
            h = jnp.dot(h.astype(compute_dtype), w,
                        preferred_element_type=jnp.float32) + b
            h = jnp.where(h > 0, h, negative_slope * h)

        # Final layer computed transposed so the store is lane-dense:
        # (1, d_last) @ (d_last, blk) -> (1, blk). The (blk, d) -> (d, blk)
        # transpose rides the otherwise-idle XLU slot.
        w_t = p[idx][...]                              # (1, d_last), compute dtype
        b_l = p[idx + 1][...]                          # (1, 1), f32
        h_t = jnp.transpose(h).astype(compute_dtype)   # (d_last, blk)
        logits_t = jnp.dot(w_t, h_t, preferred_element_type=jnp.float32) + b_l

        # sigmoid: exp on the EUP; approximate reciprocal on the EUP (no VPU divide).
        # exp(-h) -> inf for very negative h gives prob 0, no NaN.
        probs_t = pl.reciprocal(1.0 + jnp.exp(-logits_t), approx=True)
        out_ref[...] = probs_t.reshape(out_ref.shape)  # (1, 1, blk)

    return kernel


def discriminator_forward(states, actions, weights, biases, *,
                          block_b: int = 8192, use_bf16: bool = True,
                          negative_slope: float = 0.01):
    """Pallas forward pass of the Discriminator.

    Args:
      states:  (B, state_dim) float32
      actions: (B, action_dim) float32
      weights: list of (in, out) matrices (torch weight transposed), last out=1
      biases:  list of (out,) vectors
    Returns:
      probs: (B, 1) float32 — sigmoid(logits), matching torch forward().
    """
    B, state_dim = states.shape
    action_dim = actions.shape[1]
    num_layers = len(weights)
    assert num_layers >= 2, "module always has >=1 hidden layer + final Linear"
    assert weights[0].shape[0] == state_dim + action_dim
    assert weights[-1].shape[1] == 1

    compute_dtype = jnp.bfloat16 if use_bf16 else jnp.float32

    # Only tiny batches (<8 rows) are padded; everything else streams unpadded,
    # with partial final blocks handled by Pallas boundary masking.
    states = states.astype(jnp.float32)
    actions = actions.astype(jnp.float32)
    B_eff = B
    if B < 8:
        pad = 8 - B
        states = jnp.pad(states, ((0, pad), (0, 0)))
        actions = jnp.pad(actions, ((0, pad), (0, 0)))
        B_eff = 8

    blk = _choose_block(B_eff, block_b)
    num_blocks = pl.cdiv(B_eff, blk)

    # Parameters: split W1 into state/action column groups; the final weight is
    # pre-transposed to (1, d_last); biases are (1, out) f32 (epilogue stays f32).
    w1 = weights[0]
    params = [
        w1[:state_dim].astype(compute_dtype),
        w1[state_dim:].astype(compute_dtype),
        biases[0].reshape(1, -1).astype(jnp.float32),
    ]
    for w, b in zip(weights[1:-1], biases[1:-1]):
        params.append(w.astype(compute_dtype))
        params.append(b.reshape(1, -1).astype(jnp.float32))
    params.append(weights[-1].astype(compute_dtype).T)        # (1, d_last)
    params.append(biases[-1].reshape(1, 1).astype(jnp.float32))  # (1, 1)

    batch_map = lambda i: (i, 0)
    param_map = lambda i: (0, 0)

    in_specs = [
        pl.BlockSpec((blk, state_dim), batch_map),
        pl.BlockSpec((blk, action_dim), batch_map),
    ]
    for pm in params:
        in_specs.append(pl.BlockSpec(pm.shape, param_map))

    # Lane-dense output slab: one (1, blk) row per grid step; reshaped to (B, 1)
    # in the wrapper.  Block last-two dims equal the full array dims.
    out_specs = pl.BlockSpec((1, 1, blk), lambda i: (i, 0, 0))
    out_shape = jax.ShapeDtypeStruct((num_blocks, 1, blk), jnp.float32)

    # Cost estimate (advisory).
    flops = 2 * B_eff * sum(int(w.shape[0]) * int(w.shape[1]) for w in weights)
    param_bytes = sum(int(pm.size) * pm.dtype.itemsize for pm in params)
    io_bytes = B_eff * (state_dim + action_dim) * 4 + num_blocks * blk * 4
    cost = pl.CostEstimate(flops=int(flops), transcendentals=int(2 * B_eff),
                           bytes_accessed=int(io_bytes + param_bytes))

    # Generation-aware VMEM budget: double-buffered f32 input stream + resident
    # params + live f32 activations, capped at half the physical VMEM (<=64 MiB).
    try:
        vmem_cap = int(pltpu.get_tpu_info().vmem_capacity_bytes)
    except Exception:  # pragma: no cover — be conservative (v7x per-TC VMEM)
        vmem_cap = 64 * 1024 * 1024
    upper = min(vmem_cap // 2, 64 * 1024 * 1024)
    max_width = max(max(int(w.shape[1]) for w in weights), int(weights[-1].shape[0]))
    per_block = (2 * blk * (state_dim + action_dim) * 4    # dbl-buffered f32 inputs
                 + 2 * blk * 4                             # dbl-buffered output row
                 + 2 * param_bytes                         # resident params
                 + 6 * blk * max_width * 4)                # live activations / casts
    vmem_limit = int(min(upper, max(16 * 1024 * 1024, 2 * per_block)))

    kernel = _make_disc_kernel(num_layers, compute_dtype, negative_slope)

    out = pl.pallas_call(
        kernel,
        out_shape=out_shape,
        grid=(num_blocks,),
        in_specs=in_specs,
        out_specs=out_specs,
        compiler_params=pltpu.CompilerParams(
            dimension_semantics=("parallel",),
            vmem_limit_bytes=vmem_limit,
        ),
        cost_estimate=cost,
    )(states, actions, *params)

    # (num_blocks, 1, blk) -> (num_blocks*blk, 1), drop any padded/garbage tail rows.
    return out.reshape(num_blocks * blk, 1)[:B]


def _reference_forward(states, actions, weights, biases, *,
                       compute_dtype=jnp.bfloat16):
    """Pure-JAX reference mirroring the kernel's dtype strategy (exact sigmoid)."""
    h = jnp.concatenate([states, actions], axis=-1)
    n = len(weights)
    for i, (w, b) in enumerate(zip(weights, biases)):
        h = jnp.dot(h.astype(compute_dtype), w.astype(compute_dtype),
                    preferred_element_type=jnp.float32) + b.astype(jnp.float32)
        if i < n - 1:
            h = jnp.where(h > 0, h, 0.01 * h)
    return 1.0 / (1.0 + jnp.exp(-h))


def _reference_forward_f32(states, actions, weights, biases):
    """Exact float32 torch-semantics reference (numerics sanity check)."""
    h = jnp.concatenate([states, actions], axis=-1).astype(jnp.float32)
    n = len(weights)
    for i, (w, b) in enumerate(zip(weights, biases)):
        h = h @ w.astype(jnp.float32) + b.astype(jnp.float32)
        if i < n - 1:
            h = jnp.where(h > 0, h, 0.01 * h)
    return 1.0 / (1.0 + jnp.exp(-h))


if __name__ == "__main__":
    # Small deterministic setup: state_dim=24, action_dim=8 (net_in=32),
    # net_dims=[64, 64], batch=16 (=> blk=8, grid=2 — exercises the multi-step path).
    state_dim = 24
    action_dim = 8
    net_dims = [64, 64]
    batch = 16

    key = jax.random.PRNGKey(0)
    dims = [state_dim + action_dim] + net_dims + [1]
    weights, biases = [], []
    for i in range(len(dims) - 1):
        key, kw, kb = jax.random.split(key, 3)
        bound = 1.0 / float(jnp.sqrt(jnp.float32(dims[i])))
        weights.append(jax.random.uniform(
            kw, (dims[i], dims[i + 1]), jnp.float32, -bound, bound))
        biases.append(jax.random.uniform(
            kb, (dims[i + 1],), jnp.float32, -bound, bound))

    key, ks, ka = jax.random.split(key, 3)
    states = jax.random.normal(ks, (batch, state_dim), jnp.float32)
    actions = jax.random.normal(ka, (batch, action_dim), jnp.float32)

    probs = discriminator_forward(states, actions, weights, biases)
    jax.block_until_ready(probs)

    ref = _reference_forward(states, actions, weights, biases)
    ref_f32 = _reference_forward_f32(states, actions, weights, biases)

    assert probs.shape == (batch, 1)
    # Check against the dtype-matched reference (approx-reciprocal sigmoid budget).
    assert jnp.allclose(probs, ref, atol=5e-3, rtol=5e-3), \
        f"max abs err {float(jnp.max(jnp.abs(probs - ref)))}"
    # Loose check against exact-f32 torch semantics (bf16 matmul error budget).
    assert jnp.allclose(probs, ref_f32, atol=2.5e-2, rtol=2.5e-2), \
        f"max abs err {float(jnp.max(jnp.abs(probs - ref_f32)))}"

    print("KERNEL_OK")
</pallas_src>

<mosaic_0001>
module attributes {stable_mosaic.version = 11 : i64} {
  func.func @kernel(%arg0: i32, %arg1: memref<8x24xf32, #tpu.memory_space<vmem>>, %arg2: memref<8x8xf32, #tpu.memory_space<vmem>>, %arg3: memref<24x64xbf16, #tpu.memory_space<vmem>>, %arg4: memref<8x64xbf16, #tpu.memory_space<vmem>>, %arg5: memref<1x64xf32, #tpu.memory_space<vmem>>, %arg6: memref<64x64xbf16, #tpu.memory_space<vmem>>, %arg7: memref<1x64xf32, #tpu.memory_space<vmem>>, %arg8: memref<1x64xbf16, #tpu.memory_space<vmem>>, %arg9: memref<1x1xf32, #tpu.memory_space<vmem>>, %arg10: memref<1x1x8xf32, #tpu.memory_space<vmem>>) attributes {dimension_semantics = [#tpu.dimension_semantics<parallel>], iteration_bounds = array<i64: 2>, scalar_prefetch = 0 : i64, scratch_operands = 0 : i64, tpu.core_type = #tpu.core_type<tc>, window_params = [{transform_indices = @transform_0, window_bounds = array<i64: 8, 24>}, {transform_indices = @transform_1, window_bounds = array<i64: 8, 8>}, {pipeline_mode = #tpu.pipeline_mode<synchronous>, transform_indices = @transform_2, window_bounds = array<i64: 24, 64>}, {pipeline_mode = #tpu.pipeline_mode<synchronous>, transform_indices = @transform_3, window_bounds = array<i64: 8, 64>}, {pipeline_mode = #tpu.pipeline_mode<synchronous>, transform_indices = @transform_4, window_bounds = array<i64: 1, 64>}, {pipeline_mode = #tpu.pipeline_mode<synchronous>, transform_indices = @transform_5, window_bounds = array<i64: 64, 64>}, {pipeline_mode = #tpu.pipeline_mode<synchronous>, transform_indices = @transform_6, window_bounds = array<i64: 1, 64>}, {pipeline_mode = #tpu.pipeline_mode<synchronous>, transform_indices = @transform_7, window_bounds = array<i64: 1, 64>}, {pipeline_mode = #tpu.pipeline_mode<synchronous>, transform_indices = @transform_8, window_bounds = array<i64: 1, 1>}, {transform_indices = @transform_9, window_bounds = array<i64: 1, 1, 8>}]} {
    %c0 = arith.constant 0 : index
    %c0_0 = arith.constant 0 : index
    %0 = vector.load %arg1[%c0, %c0_0] : memref<8x24xf32, #tpu.memory_space<vmem>>, vector<8x24xf32>
    %1 = arith.truncf %0 : vector<8x24xf32> to vector<8x24xbf16>
    %c0_1 = arith.constant 0 : index
    %c0_2 = arith.constant 0 : index
    %2 = vector.load %arg2[%c0_1, %c0_2] : memref<8x8xf32, #tpu.memory_space<vmem>>, vector<8x8xf32>
    %3 = arith.truncf %2 : vector<8x8xf32> to vector<8x8xbf16>
    %c0_3 = arith.constant 0 : index
    %c0_4 = arith.constant 0 : index
    %4 = vector.load %arg3[%c0_3, %c0_4] : memref<24x64xbf16, #tpu.memory_space<vmem>>, vector<24x64xbf16>
    %cst = arith.constant dense<0.000000e+00> : vector<8x64xf32>
    %5 = tpu.matmul %1, %4, %cst {dimension_numbers = #tpu.dot_dimension_numbers<[1], [0], [0], [1], [0, 0, 1, 1], [], []>} : vector<8x24xbf16>, vector<24x64xbf16>, vector<8x64xf32> -> vector<8x64xf32>
    %c0_5 = arith.constant 0 : index
    %c0_6 = arith.constant 0 : index
    %6 = vector.load %arg4[%c0_5, %c0_6] : memref<8x64xbf16, #tpu.memory_space<vmem>>, vector<8x64xbf16>
    %cst_7 = arith.constant dense<0.000000e+00> : vector<8x64xf32>
    %7 = tpu.matmul %3, %6, %cst_7 {dimension_numbers = #tpu.dot_dimension_numbers<[1], [0], [0], [1], [0, 0, 1, 1], [], []>} : vector<8x8xbf16>, vector<8x64xbf16>, vector<8x64xf32> -> vector<8x64xf32>
    %8 = arith.addf %5, %7 : vector<8x64xf32>
    %c0_8 = arith.constant 0 : index
    %c0_9 = arith.constant 0 : index
    %9 = vector.load %arg5[%c0_8, %c0_9] : memref<1x64xf32, #tpu.memory_space<vmem>>, vector<1x64xf32>
    %10 = vector.broadcast %9 : vector<1x64xf32> to vector<8x64xf32>
    %11 = arith.addf %8, %10 : vector<8x64xf32>
    %cst_10 = arith.constant 0.000000e+00 : f32
    %12 = vector.broadcast %cst_10 : f32 to vector<8x64xf32>
    %13 = arith.cmpf ogt, %11, %12 : vector<8x64xf32>
    %cst_11 = arith.constant 0.00999999977 : f32
    %14 = vector.broadcast %cst_11 : f32 to vector<8x64xf32>
    %15 = arith.mulf %14, %11 : vector<8x64xf32>
    %16 = arith.select %13, %11, %15 : vector<8x64xi1>, vector<8x64xf32>
    %c0_12 = arith.constant 0 : index
    %c0_13 = arith.constant 0 : index
    %17 = vector.load %arg6[%c0_12, %c0_13] : memref<64x64xbf16, #tpu.memory_space<vmem>>, vector<64x64xbf16>
    %c0_14 = arith.constant 0 : index
    %c0_15 = arith.constant 0 : index
    %18 = vector.load %arg7[%c0_14, %c0_15] : memref<1x64xf32, #tpu.memory_space<vmem>>, vector<1x64xf32>
    %19 = arith.truncf %16 : vector<8x64xf32> to vector<8x64xbf16>
    %cst_16 = arith.constant dense<0.000000e+00> : vector<8x64xf32>
    %20 = tpu.matmul %19, %17, %cst_16 {dimension_numbers = #tpu.dot_dimension_numbers<[1], [0], [0], [1], [0, 0, 1, 1], [], []>} : vector<8x64xbf16>, vector<64x64xbf16>, vector<8x64xf32> -> vector<8x64xf32>
    %21 = vector.broadcast %18 : vector<1x64xf32> to vector<8x64xf32>
    %22 = arith.addf %20, %21 : vector<8x64xf32>
    %cst_17 = arith.constant 0.000000e+00 : f32
    %23 = vector.broadcast %cst_17 : f32 to vector<8x64xf32>
    %24 = arith.cmpf ogt, %22, %23 : vector<8x64xf32>
    %cst_18 = arith.constant 0.00999999977 : f32
    %25 = vector.broadcast %cst_18 : f32 to vector<8x64xf32>
    %26 = arith.mulf %25, %22 : vector<8x64xf32>
    %27 = arith.select %24, %22, %26 : vector<8x64xi1>, vector<8x64xf32>
    %c0_19 = arith.constant 0 : index
    %c0_20 = arith.constant 0 : index
    %28 = vector.load %arg8[%c0_19, %c0_20] : memref<1x64xbf16, #tpu.memory_space<vmem>>, vector<1x64xbf16>
    %c0_21 = arith.constant 0 : index
    %c0_22 = arith.constant 0 : index
    %29 = vector.load %arg9[%c0_21, %c0_22] : memref<1x1xf32, #tpu.memory_space<vmem>>, vector<1x1xf32>
    %30 = tpu.transpose %27, [1, 0] : vector<8x64xf32> -> vector<64x8xf32>
    %31 = arith.truncf %30 : vector<64x8xf32> to vector<64x8xbf16>
    %cst_23 = arith.constant dense<0.000000e+00> : vector<1x8xf32>
    %32 = tpu.matmul %28, %31, %cst_23 {dimension_numbers = #tpu.dot_dimension_numbers<[1], [0], [0], [1], [0, 0, 1, 1], [], []>} : vector<1x64xbf16>, vector<64x8xbf16>, vector<1x8xf32> -> vector<1x8xf32>
    %33 = vector.broadcast %29 : vector<1x1xf32> to vector<1x8xf32>
    %34 = arith.addf %32, %33 : vector<1x8xf32>
    %cst_24 = arith.constant 0.000000e+00 : f32
    %35 = vector.broadcast %cst_24 : f32 to vector<1x8xf32>
    %36 = arith.subf %35, %34 : vector<1x8xf32>
    %37 = math.exp %36 : vector<1x8xf32>
    %cst_25 = arith.constant 1.000000e+00 : f32
    %38 = vector.broadcast %cst_25 : f32 to vector<1x8xf32>
    %39 = arith.addf %38, %37 : vector<1x8xf32>
    %40 = tpu.reciprocal %39 {approx = true} : vector<1x8xf32> -> vector<1x8xf32>
    %41 = vector.shape_cast %40 : vector<1x8xf32> to vector<1x1x8xf32>
    %c0_26 = arith.constant 0 : index
    %c0_27 = arith.constant 0 : index
    %c0_28 = arith.constant 0 : index
    %42 = vector.load %arg10[%c0_26, %c0_27, %c0_28] : memref<1x1x8xf32, #tpu.memory_space<vmem>>, vector<1x1x8xf32>
    tpu.vector_store %arg10[%c0_26, %c0_27, %c0_28], %41 {strides = array<i32>} : memref<1x1x8xf32, #tpu.memory_space<vmem>>, vector<1x1x8xf32>,
    return
  }
  func.func @transform_0(%arg0: i32) -> (i32, i32) {
    %c0_i32 = arith.constant 0 : i32
    %c0_i32_0 = arith.constant 0 : i32
    return %arg0, %c0_i32 : i32, i32
  }
  func.func @transform_1(%arg0: i32) -> (i32, i32) {
    %c0_i32 = arith.constant 0 : i32
    %c0_i32_0 = arith.constant 0 : i32
    return %arg0, %c0_i32 : i32, i32
  }
  func.func @transform_2(%arg0: i32) -> (i32, i32) {
    %c0_i32 = arith.constant 0 : i32
    %c0_i32_0 = arith.constant 0 : i32
    %c0_i32_1 = arith.constant 0 : i32
    return %c0_i32, %c0_i32_0 : i32, i32
  }
  func.func @transform_3(%arg0: i32) -> (i32, i32) {
    %c0_i32 = arith.constant 0 : i32
    %c0_i32_0 = arith.constant 0 : i32
    %c0_i32_1 = arith.constant 0 : i32
    return %c0_i32, %c0_i32_0 : i32, i32
  }
  func.func @transform_4(%arg0: i32) -> (i32, i32) {
    %c0_i32 = arith.constant 0 : i32
    %c0_i32_0 = arith.constant 0 : i32
    %c0_i32_1 = arith.constant 0 : i32
    return %c0_i32, %c0_i32_0 : i32, i32
  }
  func.func @transform_5(%arg0: i32) -> (i32, i32) {
    %c0_i32 = arith.constant 0 : i32
    %c0_i32_0 = arith.constant 0 : i32
    %c0_i32_1 = arith.constant 0 : i32
    return %c0_i32, %c0_i32_0 : i32, i32
  }
  func.func @transform_6(%arg0: i32) -> (i32, i32) {
    %c0_i32 = arith.constant 0 : i32
    %c0_i32_0 = arith.constant 0 : i32
    %c0_i32_1 = arith.constant 0 : i32
    return %c0_i32, %c0_i32_0 : i32, i32
  }
  func.func @transform_7(%arg0: i32) -> (i32, i32) {
    %c0_i32 = arith.constant 0 : i32
    %c0_i32_0 = arith.constant 0 : i32
    %c0_i32_1 = arith.constant 0 : i32
    return %c0_i32, %c0_i32_0 : i32, i32
  }
  func.func @transform_8(%arg0: i32) -> (i32, i32) {
    %c0_i32 = arith.constant 0 : i32
    %c0_i32_0 = arith.constant 0 : i32
    %c0_i32_1 = arith.constant 0 : i32
    return %c0_i32, %c0_i32_0 : i32, i32
  }
  func.func @transform_9(%arg0: i32) -> (i32, i32, i32) {
    %c0_i32 = arith.constant 0 : i32
    %c0_i32_0 = arith.constant 0 : i32
    %c0_i32_1 = arith.constant 0 : i32
    return %arg0, %c0_i32, %c0_i32_0 : i32, i32, i32
  }
}

</mosaic_0001>

<bundles_post_ra>
// kernel: tpu_custom_call.1
= control target key start
LH: loop header
LB: loop body
LE: loop exit
PB: predicated region body
PF: predicated region fallthrough
CT: control target
= control target key end

     0   :  { %s1381_s0 = inlined_call_operand.hbm [shape: f32[16,24], index: 0, kind: input, shape index: {}]   ;;  %s1382_s1 = inlined_call_operand.vmem [shape: f32[16,8], index: 1, kind: input, shape index: {}]   ;;  %s1383_s2 = inlined_call_operand.vmem [shape: bf16[24,64], index: 2, kind: input, shape index: {}]   ;;  %s1384_s3 = inlined_call_operand.hbm [shape: bf16[8,64], index: 3, kind: input, shape index: {}]   ;;  %s1385_s4 = inlined_call_operand.vmem [shape: f32[1,64], index: 4, kind: input, shape index: {}]   ;;  %s1386_s5 = inlined_call_operand.vmem [shape: bf16[64,64], index: 5, kind: input, shape index: {}]   ;;  %s1387_s6 = inlined_call_operand.vmem [shape: f32[1,64], index: 6, kind: input, shape index: {}]   ;;  %s1388_s7 = inlined_call_operand.vmem [shape: bf16[1,64], index: 7, kind: input, shape index: {}]   ;;  %s1389_s8 = inlined_call_operand.<no memory space> [shape: f32[1,1], index: 8, kind: input, shape index: {}]   ;;  %s1390_s9 = inlined_call_operand.hbm [shape: f32[2,1,8], index: 9, kind: output, shape index: {}]  }
   0x1   :  { %v14_v0 = vstv %s1389_s8 }
   0x2   :  { %15 = vst [vmem:[#allocation2] sm:$0x1] %v14_v0 }
   0x3   :  { %16 = vsyncpa [#allocation4], 0 }
   0x4   :  { %18 = vsyncpa [#allocation4 + $0x1], 0 }
   0x5   :  { %19 = vsyncpa [#allocation7], 0 }
   0x6   :  { %20 = vsyncpa [#allocation5], 0 }
   0x7   :  { %22 = vsyncpa [#allocation5 + $0x1], 0  ;;  %s1126_s11 = smov 0   ;;  %s1128_s12 = smov 0  }
   0x8   :  { %s1130_s13 = smov 0   ;;  %s1132_s14 = smov 0  }
   0x9 LB: > { %s1147_s8 = sadd.s32 4294967295, %s1065_s14   ;;  %s788_s15 = sadd.s32 4294967294, %s1065_s14   ;;  %s1065_s14 = sphi %s1132_s14, %s1414_s14   ;;  %s1061_s13 = sphi %s1130_s13, %s1413_s13   ;;  %s1057_s12 = sphi %s1128_s12, %s1412_s12   ;;  %s1053_s11 = sphi %s1126_s11, %s1411_s11  }
   0xa   : > { %p48_p0 = scmp.ne.s32.totalorder %s1057_s12, %s1053_s11  ;;  %p1391_p1 = scmp.eq.s32.totalorder %s1147_s8, 0 }
   0xb   : > { %p251_p3 = scmp.eq.s32.totalorder %s788_s15, 1  ;;  %p789_p5 = scmp.ge.s32.totalorder %s1065_s14, 1 }
   0xc   : > { %p1156_p4 = por %p1391_p1, %p48_p0  ;;  %p258_p7 = scmp.lt.s32.totalorder %s1065_s14, 3 }
   0xd   : > { %p1161_p6 = por %p251_p3, %p48_p0  ;;  %s1067_s19 = smov [#allocation6]  }
   0xe   : > { %s1394_s16 = scalar_select %p1156_p4, 1, 0 }
   0xf   : > { %s1395_s17 = scalar_select %p1161_p6, 1, 0 }
  0x10   : > { %p1166_p8 = pnand %p789_p5, %p258_p7  ;;  %s274_s20 = sshll.u32 %s1067_s19, 4  ;;  %s275_s20 = int_to_ptr.vmem [resolvable:$true] %s274_s20 }
  0x11   : > { %s1174_s21 = sadd.s32 1, %s1065_s14   ;;  %s35_s25 = sadd.s32 1, %s1061_s13 }
  0x12   : > { %s1396_s18 = scalar_select %p1166_p8, 1, 0 }
  0x13   : > { %p874_p10 = pneg %p1166_p8  ;;  %s32_s23 = ssub.s32 %s1065_s14, %s1174_s21 }
  0x14   : > { %p1184_p12 = scmp.eq.s32.totalorder %s32_s23, 0  ;;  %s937_s28 = scalar_lea.hbm %s1384_s3, 64 }
  0x15   : > { %p1178_p11 = pnand %p874_p10, %p1391_p1  ;;  %p938_p0 = scmp.ne.s32.totalorder %s1384_s3, %s937_s28 }
  0x16   : > { %s1398_s24 = scalar_select %p1184_p12, 1, 0 }
  0x17   : > { %p939_p3 = pneg %p1178_p11  ;;  %p944_p10 = scmp.lt.u32.totalorder %s937_s28, %s1384_s3 }
  0x19   : > { %p940_p5 = pnand %p939_p3, %p938_p0 }
  0x1b   : > { %p941_p7 = pneg %p940_p5 }
  0x1d   : > { %p946_p9 = pnand %p944_p10, %p941_p7 }
  0x1f   : > { %949 = shalt.err (!%p946_p9)
}
  0x20   : > { %s950_s19 = scalar_lea.vmem %s275_s20, 64  ;;  %p958_p6 = scmp.lt.s32.totalorder %s275_s20, %s275_s20 }
  0x21   : > { %p951_p1 = scmp.ne.s32.totalorder %s275_s20, %s950_s19  ;;  %p959_p4 = scmp.lt.s32.totalorder %s950_s19, %s950_s19 }
  0x23   : > { %p953_p2 = pnand %p951_p1, %p939_p3  ;;  %p960_p8 = por %p959_p4, %p958_p6 }
  0x25   : > { %p954_p13 = pneg %p953_p2 }
  0x27   : > { %p961_p12 = pnand %p960_p8, %p954_p13 }
  0x29   : > { %964 = shalt.err (!%p961_p12)
}
  0x2a   : > { %877 = dma.hbm_to_vmem [thread:$0]  (!%p1178_p11), %s1384_s3, 64, %s275_s20, [#allocation7]  }
  0x2b   : > { %p1399_p1 = scmp.ne.s32.totalorder %s1398_s24, 0  ;;  %p43_p2 = scmp.eq.s32.totalorder %s1065_s14, 0 }
  0x2c   : > { %p1400_p4 = scmp.ne.s32.totalorder %s1061_s13, %s1057_s12  ;;  %p1401_p6 = scmp.eq.s32.totalorder %s1147_s8, 1 }
  0x2d   : > { %s1210_s27 = scalar_select %p1399_p1, %s1061_s13, %s35_s25  }
  0x2e   : > { %p1218_p8 = por %p1401_p6, %p1400_p4  ;;  %p887_p9 = scmp.lt.s32.totalorder %s1065_s14, 2 }
  0x2f   : > { %s300_s28 = sand.u32 1, %s1061_s13   ;;  %p1403_p12 = pmov %p1400_p4 }
  0x30   : > { %s792_s29 = sshll.u32 %s300_s28, 3  ;;  %s793_s30 = sshll.u32 %s1065_s14, 7 }
  0x31   : > { %p44_p13 = por %p43_p2, %p1403_p12  ;;  %s1231_s20 = scalar_lea.hbm %s1381_s0, %s793_s30 }
  0x32   : > { %s304_s24 = scalar_lea.vmem [#allocation3], %s792_s29  ;;  %s301_s23 = scalar_lea.sflag [#allocation4], %s300_s28 }
  0x33   : > { %s311_s25 = sshll.u32 %s304_s24, 4  ;;  %p1233_p11 = pnand %p887_p9, %p44_p13  ;;  %s1237_s25 = int_to_ptr.vmem [resolvable:$true] %s311_s25 }
  0x34   : > { %s965_s26 = scalar_lea.hbm %s1231_s20, 128  ;;  %s970_s10 = scalar_lea.hbm %s1381_s0, 256 }
  0x35   : > { %p966_p0 = scmp.ne.s32.totalorder %s1231_s20, %s965_s26  ;;  %p967_p3 = pneg %p1233_p11 }
  0x36   : > { %p971_p10 = scmp.lt.u32.totalorder %s1231_s20, %s1381_s0  ;;  %p972_p1 = scmp.lt.u32.totalorder %s970_s10, %s965_s26 }
  0x37   : > { %p968_p5 = pnand %p967_p3, %p966_p0  ;;  %p974_p4 = scmp.lt.u32.totalorder %s965_s26, %s1231_s20 }
  0x38   : > { %p973_p2 = por %p972_p1, %p971_p10 }
  0x39   : > { %p969_p7 = pneg %p968_p5 }
  0x3a   : > { %p975_p6 = por %p974_p4, %p973_p2 }
  0x3c   : > { %p976_p9 = pnand %p975_p6, %p969_p7 }
  0x3e   : > { %979 = shalt.err (!%p976_p9)
}
  0x3f   : > { %s980_s28 = scalar_lea.vmem %s1237_s25, 128  ;;  %s1068_s30 = smov [#allocation3]  }
  0x40   : > { %p981_p12 = scmp.ne.s32.totalorder %s1237_s25, %s980_s28  ;;  %s985_s29 = sshll.u32 %s1068_s30, 4  ;;  %s986_s29 = int_to_ptr.vmem [resolvable:$false] %s985_s29 }
  0x41   : > { %s987_s15 = scalar_lea.vmem %s986_s29, 256  ;;  %p988_p5 = scmp.lt.s32.totalorder %s1237_s25, %s986_s29 }
  0x42   : > { %p983_p13 = pnand %p981_p12, %p967_p3  ;;  %p989_p10 = scmp.lt.s32.totalorder %s987_s15, %s980_s28 }
  0x44   : > { %p984_p0 = pneg %p983_p13  ;;  %p990_p1 = por %p989_p10, %p988_p5 }
  0x46   : > { %p991_p2 = pnand %p990_p1, %p984_p0 }
  0x48   : > { %994 = shalt.err (!%p991_p2)
}
  0x49   : > { %881 = dma.hbm_to_vmem [thread:$0]  (!%p1233_p11), %s1231_s20, 128, %s1237_s25, %s301_s23  }
  0x4a   : > { %p1405_p7 = scmp.ne.s32.totalorder %s1396_s18, 0 }
  0x4b   : > { %s1267_s26 = sand.u32 (!%p1405_p7), 1, %s1057_s12   ;;  %p1406_p3 = scmp.ne.s32.totalorder (!%p1405_p7), %s1394_s16, 0 }
  0x4c   : > { %327 = sbr.rel (%p1405_p7) target bundleno = 954 (0x3ba), region = 56  ;;  %s795_s10 = sshll.u32 (!%p1405_p7), %s1267_s26, 3 }
  0x4d   : > { %s330_s24 = scalar_lea.sflag (!%p1405_p7), [#allocation4], %s1267_s26  ;;  %s333_s28 = scalar_lea.vmem (!%p1405_p7), [#allocation3], %s795_s10 }
  0x53   : > { %1040 = dma.done.wait (%p1406_p3), %s330_s24, 128  }
  0x54   : > { %1042 = vsyncadd (%p1406_p3), %s330_s24, 4294967168  ;;  %p1407_p4 = scmp.eq.s32.totalorder %s1147_s8, 0 }
  0x56   : > { %1044 = dma.done.wait (%p1407_p4), [#allocation7], 64   ;;  %p1408_p11 = pmov %p1407_p4 }
  0x57   : > { %p375_p6 = scmp.lt.s32.totalorder %s1147_s8, 1  ;;  %v1069_v1 = vmov 0.0   ;;  %vm1070_vm0 = vmmov 0   ;;  %vm392_vm1 = vcmask 1043456   ;;  %v927_v2 = vld [vmem:[%s1383_s2] sm:$0xff]   ;;  %vm388_vm2 = vcmask 64512  }
  0x58   : > { %1046 = vsyncadd (%p1408_p11), [#allocation7], 4294967232  ;;  %834 = vmatprep.subr.bf16.mxu1 %v1069_v1  ;;  %828 = vmatprep.subr.bf16.mxu0 %v1069_v1  ;;  %v387_v3 = vld [vmem:[#allocation6] sm:$0xf]  ;;  %v928_v7 = vld [vmem:[%s1383_s2 + $0x8] ss:$0 sps:$4 sm:$0xff]   ;;  %v633_v52 = vlaneseq }
  0x59   : > { %830 = vmatprep.mubr.msk.bf16.mxu0 %vm1070_vm0, %v1069_v1  ;;  %s376_s16 = scalar_select %p375_p6, %s1147_s8, 1  ;;  %838 = vmatprep.mubr.msk.bf16.mxu1 %vm1070_vm0, %v1069_v1  ;;  %v394_v5 = vsel %vm392_vm1, %v387_v3, 0  ;;  %v380_v8 = vld [vmem:[%s333_s28] sm:$0xff]  ;;  %v450_v10 = vsel %vm392_vm1, %v928_v7, 0  ;;  %vm445_vm3 = vcmask 195584   ;;  %v932_v14 = vld [vmem:[%s1386_s5 + $0x18] sm:$0xff]  }
  0x5a   : > { %835 = vmatpush3.bf16.msra.mxu1 %v927_v2  ;;  %829 = vmatpush3.bf16.msra.mxu0 %v394_v5  ;;  %v929_v9 = vld [vmem:[%s1386_s5] sm:$0xff]   ;;  %v381_v11 = vpack.c.bf16 %v380_v8, %v380_v8  ;;  %v930_v12 = vld [vmem:[%s1386_s5 + $0x8] sm:$0xff]   ;;  %v931_v13 = vld [vmem:[%s1386_s5 + $0x10] sm:$0xff]   ;;  %vm543_vm5 = vcmask 523264   ;;  %v1071_v37 = vmov 0   ;;  %v634_v53 = vshrl.u32 %v633_v52, 7 }
  0x5b   : > { %s797_s18 = sshll.u32 %s376_s16, 3  ;;  %836 = vmatprep.subr.bf16.mxu1 %v1069_v1  ;;  %842 = vmatprep.subr.bf16.mxu0 %v1069_v1  ;;  %v802_v20 = vld [vmem:[%s1385_s4] ss:$0 sm:$0xff]  ;;  %s810_s28 = sshll.u32 %s1147_s8, 4  ;;  %vm685_vm7 = vcmask 57344  }
  0x5c   : > { %s378_s19 = scalar_lea.vmem %s1382_s1, %s797_s18  ;;  %v803_v29 = vld [vmem:[%s1387_s6] ss:$0 sm:$0xff]  ;;  %v635_v54 = vsub.s32 0, %v634_v53  ;;  %s374_s16 = scalar_lea.vmem [#allocation8], %s1267_s26 }
  0x5d   : > { %v382_v4 = vld [vmem:[%s378_s19] sm:$0xff]  ;;  %s700_s18 = sshll.u32 %s374_s16, 4  ;;  %s1337_s19 = scalar_lea.hbm %s1390_s9, %s810_s28  ;;  %s1339_s18 = int_to_ptr.vmem [resolvable:$true] %s700_s18 }
  0x5e   : > { %v383_v6 = vpack.c.bf16 %v382_v4, %v382_v4  ;;  %837 = vmatpush3.bf16.msra.mxu1 %v450_v10  ;;  %v591_v38 = vld [vmem:[#allocation2] sm:$0x1]  ;;  %s688_s23 = scalar_lea.sflag [#allocation5], %s1267_s26  ;;  %s995_s30 = scalar_lea.vmem %s1339_s18, 16 }
  0x5f   : > { %854 = vmatprep.subr.bf16.mxu1 %v1069_v1  ;;  %v590_v51 = vld [vmem:[%s1388_s7] sm:$0x1]  ;;  %p996_p9 = scmp.ne.s32.totalorder %s1339_s18, %s995_s30  ;;  %s1072_s8 = smov [#allocation8]  }
  0x60   : > { %831 = vmatmul.mubr.msk.bf16.vlgmr.msra.gmra.mrb[0].mxu0 %vm388_vm2, %v383_v6  ;;  %s999_s29 = sshll.u32 %s1072_s8, 4  ;;  %s1000_s29 = int_to_ptr.vmem [resolvable:$false] %s999_s29 }
  0x61   : > { %843 = vmatpush3.bf16.msra.mxu0 %v929_v9  ;;  %850 = vmatprep.mubr.msk.bf16.mxu0 %vm1070_vm0, %v1069_v1  ;;  %p997_p12 = pnand %p996_p9, %p1218_p8  ;;  %s1001_s15 = scalar_lea.vmem %s1000_s29, 32 }
  0x62   : > { %844 = vmatprep.subr.bf16.mxu0 %v1069_v1  ;;  %839 = vmatmul.mubr.msk.bf16.vlgmr.msra.gmra.mrb[0].mxu1 %vm445_vm3, %v381_v11  ;;  %p1002_p0 = scmp.lt.s32.totalorder %s1339_s18, %s1000_s29  ;;  %p1003_p5 = scmp.lt.s32.totalorder %s1001_s15, %s995_s30 }
  0x63   : > { %862 = vmatprep.mubr.msk.bf16.mxu1 %vm1070_vm0, %v1069_v1  ;;  %p998_p13 = pneg %p997_p12 }
  0x64   : > { %p1004_p10 = por %p1003_p5, %p1002_p0 }
  0x65   : > { %845 = vmatpush3.bf16.msra.mxu0 %v930_v12 }
  0x66   : > { %846 = vmatprep.subr.bf16.mxu0 %v1069_v1  ;;  %p1005_p1 = pnand %p1004_p10, %p998_p13 }
  0x69   : > { %847 = vmatpush3.bf16.msra.mxu0 %v931_v13 }
  0x6a   : > { %848 = vmatprep.subr.bf16.mxu0 %v1069_v1 }
  0x6d   : > { %849 = vmatpush3.bf16.msra.mxu0 %v932_v14 }
 0x133   : > { %v430_v15 = vpop.f32.mrb[0].mxu0 }
 0x134   : > { %v832_v16 = vpop.f32.mrb[1].mxu0 }
 0x135   : > { %v433_v17 = vpop.f32.mrb[2].mxu0  ;;  %v486_v19 = vpop.f32.mrb[0].mxu1 }
 0x136   : > { %v833_v18 = vpop.f32.mrb[3].mxu0  ;;  %v487_v21 = vadd.f32 %v486_v19, %v430_v15  ;;  %v840_v22 = vpop.f32.mrb[1].mxu1 }
 0x137   : > { %v489_v23 = vpop.f32.mrb[2].mxu1 }
 0x138   : > { %v499_v24 = vadd.f32 %v802_v20, %v487_v21  ;;  %v841_v25 = vpop.f32.mrb[3].mxu1 }
 0x13a   : > { %vm500_vm4 = vcmp.gt.f32.partialorder %v499_v24, 0.0  ;;  %v501_v26 = vmul.f32 0.01, %v499_v24 }
 0x13c   : > { %v502_v27 = vsel %vm500_vm4, %v499_v24, %v501_v26 }
 0x13d   : > { %v512_v28 = vpack.c.bf16 %v502_v27, %v502_v27 }
 0x13f   : > { %851 = vmatmul.mubr.msk.bf16.vlgmr.msra.gmra.mrb[4].mxu0 %vm543_vm5, %v512_v28 }
 0x212   : > { %v581_v30 = vpop.f32.mrb[4].mxu0 }
 0x213   : > { %v582_v31 = vadd.f32 %v803_v29, %v581_v30  ;;  %v852_v32 = vpop.f32.mrb[5].mxu0 }
 0x214   : > { %v584_v33 = vpop.f32.mrb[6].mxu0 }
 0x215   : > { %v853_v34 = vpop.f32.mrb[7].mxu0  ;;  %vm587_vm6 = vcmp.gt.f32.partialorder %v582_v31, 0.0  ;;  %v588_v35 = vmul.f32 0.01, %v582_v31 }
 0x217   : > { %v589_v36 = vsel %vm587_vm6, %v582_v31, %v588_v35 }
 0x218   : > { %592 = vxpose.xlu0.b32.start.end [1/1] (short) (narrow) %v589_v36, 64 }
 0x241   : > { %926 = vset.pattern.permute.xlu0 %v1071_v37 }
 0x25d   : > { %630 = vperm.xlu0 %926, %v591_v38  }
 0x298   : > { %v608_v39 = vpop.trf.xlu0 }
 0x29c   : > { %v609_v40 = vpop.trf.xlu0 }
 0x29d   : > { %v624_v41 = vpack.c.bf16 %v609_v40, %v608_v39 }
 0x29f   : > { %855 = vmatpush3.bf16.msra.mxu1 %v624_v41 }
 0x2a0   : > { %v610_v42 = vpop.trf.xlu0  ;;  %856 = vmatprep.subr.bf16.mxu1 %v1069_v1 }
 0x2a4   : > { %v611_v43 = vpop.trf.xlu0 }
 0x2a5   : > { %v625_v44 = vpack.c.bf16 %v611_v43, %v610_v42 }
 0x2a7   : > { %857 = vmatpush3.bf16.msra.mxu1 %v625_v44 }
 0x2a8   : > { %v612_v45 = vpop.trf.xlu0  ;;  %858 = vmatprep.subr.bf16.mxu1 %v1069_v1 }
 0x2ac   : > { %v613_v46 = vpop.trf.xlu0 }
 0x2ad   : > { %v626_v47 = vpack.c.bf16 %v613_v46, %v612_v45 }
 0x2af   : > { %859 = vmatpush3.bf16.msra.mxu1 %v626_v47 }
 0x2b0   : > { %v614_v48 = vpop.trf.xlu0  ;;  %860 = vmatprep.subr.bf16.mxu1 %v1069_v1 }
 0x2b4   : > { %v615_v49 = vpop.trf.xlu0 }
 0x2b5   : > { %v627_v50 = vpack.c.bf16 %v615_v49, %v614_v48 }
 0x2b7   : > { %861 = vmatpush3.bf16.msra.mxu1 %v627_v50 }
 0x2ba   : > { %863 = vmatmul.mubr.msk.bf16.vlgmr.msra.gmra.mrb[4].mxu1 %vm543_vm5, %v590_v51 }
 0x2dc   : > { %v631_v55 = vpop.permute.xlu0 %630 }
 0x2dd   : > { %v636_v56 = vrot.slane %v631_v55, %v635_v54 }
 0x38d   : > { %v674_v57 = vpop.f32.mrb[4].mxu1 }
 0x38e   : > { %v675_v58 = vadd.f32 %v674_v57, %v636_v56  ;;  %v864_v59 = vpop.f32.mrb[5].mxu1 }
 0x38f   : > { %v677_v60 = vpop.f32.mrb[6].mxu1 }
 0x390   : > { %v680_v61 = vsub.f32 0.0, %v675_v58  ;;  %v865_v62 = vpop.f32.mrb[7].mxu1 }
 0x392   : > { %v681_v63 = vmul.f32 1.442695, %v680_v61 }
 0x394   : > { %933 = vpow2.f32 %v681_v63 }
 0x39e   : > { %v934_v0 = vpop.eup %933 }
 0x39f   : > { %v683_v1 = vadd.f32 1.0, %v934_v0 }
 0x3a1   : > { %935 = vrcp.f32 %v683_v1 }
 0x3ab   : > { %v936_v2 = vpop.eup %935 }
 0x3ac   : > { %686 = vst.msk [vmem:[%s374_s16] sm:$0x1] %vm685_vm7, %v936_v2 }
 0x3ad   : > { %1008 = shalt.err (!%p1005_p1)
}
 0x3ae   : > { %s1009_s26 = scalar_lea.hbm %s1337_s19, 16  ;;  %s1013_s28 = scalar_lea.hbm %s1390_s9, 32 }
 0x3af   : > { %p1010_p2 = scmp.ne.s32.totalorder %s1337_s19, %s1009_s26  ;;  %p1014_p4 = scmp.lt.u32.totalorder %s1337_s19, %s1390_s9 }
 0x3b0   : > { %p1015_p11 = scmp.lt.u32.totalorder %s1013_s28, %s1009_s26  ;;  %p1017_p9 = scmp.lt.u32.totalorder %s1009_s26, %s1337_s19 }
 0x3b1   : > { %p1011_p7 = pnand %p1010_p2, %p1218_p8 }
 0x3b2   : > { %p1016_p6 = por %p1015_p11, %p1014_p4 }
 0x3b3   : > { %p1012_p3 = pneg %p1011_p7 }
 0x3b4   : > { %p1018_p12 = por %p1017_p9, %p1016_p6 }
 0x3b6   : > { %p1019_p13 = pnand %p1018_p12, %p1012_p3 }
 0x3b8   : > { %1022 = shalt.err (!%p1019_p13)
}
 0x3b9   : > { %872 = dma.vmem_to_hbm [thread:$0]  (%p1218_p8), %s1339_s18, 16, %s1337_s19, %s688_s23  }
 0x3ba PF: > { %s712_s25 = sand.u32 1, %s1053_s11   ;;  %p1409_p0 = scmp.ne.s32.totalorder %s1395_s17, 0 }
 0x3bb   : > { %p1410_p5 = scmp.ge.s32.totalorder %s1065_s14, 2  ;;  %s713_s30 = scalar_lea.sflag [#allocation5], %s712_s25 }
 0x3bd   : > { %p883_p10 = pnand %p1410_p5, %p1409_p0 }
 0x3bf   : > { %1048 = dma.done.wait (!%p883_p10), %s713_s30, 16  }
 0x3c0   : > { %1050 = vsyncadd (!%p883_p10), %s713_s30, 4294967280  ;;  %p25_p1 = scmp.ge.s32.totalorder %s1174_s21, 4   ;;  %s1411_s11 = smov %s1057_s12 }
 0x3c1   : > { %s1412_s12 = smov %s1061_s13  ;;  %s1413_s13 = smov %s1210_s27 }
 0x3c2   : > { %s1414_s14 = smov %s1174_s21  ;;  %27 = sbr.rel (!%p25_p1) target bundleno = 9 (0x9), region = 108 }
 0x3c9   :  { %717 = vsyncpa [#allocation4], 1 }
 0x3ca   :  { %719 = vsyncpa [#allocation4 + $0x1], 1 }
 0x3cb   :  { %720 = vsyncpa [#allocation7], 1 }
 0x3cc   :  { %721 = vsyncpa [#allocation5], 1 }
 0x3cd   :  { %723 = vsyncpa [#allocation5 + $0x1], 1 }

</bundles_post_ra>
